<compile_context>
chip_gen: v5e
topology: v5e:2x2
jax: 0.10.0
libtpu: 0.0.40
codegen_flags: <defaults>
</compile_context>

<pallas_src>
import jax
import jax.numpy as jnp
from jax.experimental import pallas as pl
from jax.experimental.pallas import tpu as pltpu


def edge_score_kernel(hu_ref, hv_ref, wsrc_ref, wdst_ref, b_ref, o_ref):
    """Collapsed-affine edge score for one lane-dense edge tile.

    hu_ref, hv_ref : (F, tile_e)  gathered src / dst node features, edges on lanes
    wsrc_ref       : (F, 1)       first half of W_eff = w1 @ w2 @ w3
    wdst_ref       : (F, 1)       second half of W_eff
    b_ref          : (1,) SMEM    effective bias (b1 @ w2 + b2) @ w3 + b3
    o_ref          : (1, tile_e)  lane-dense scores
    """
    contrib = hu_ref[...] * wsrc_ref[...] + hv_ref[...] * wdst_ref[...]
    s = jnp.sum(contrib, axis=0, keepdims=True) + b_ref[0]
    o_ref[...] = s.astype(o_ref.dtype)


def mlp_predictor_scores(h_nodes, src, dst, params, *, tile_e=512):
    """Pallas implementation of MLPPredictor.forward (per-edge scores).

    h_nodes : (N, h_feats) node features
    src, dst: (E,) int32 edge endpoints
    params  : (w1 (2F,H1), b1 (1,H1), w2 (H1,H2), b2 (1,H2), w3 (H2,1), b3 (1,1))
              weights stored as (in, out) so y = x @ W + b.
    returns : (E,) edge scores
    """
    w1, b1, w2, b2, w3, b3 = params
    _, F = h_nodes.shape
    E = src.shape[0]

    # --- collapse the three Linears into a single exact affine map -------------
    # (Dropout is eval-mode identity; Sigmoid is layers[-1], skipped by apply_edges.)
    # TODO(synk): Dropout(p=0.5) implemented as eval-mode identity (no RNG masking).
    w_eff = (w1 @ w2 @ w3).astype(jnp.float32)                        # (2F, 1)
    b_eff = ((b1 @ w2 + b2) @ w3 + b3).reshape((1,)).astype(jnp.float32)
    w_src = w_eff[:F]                                                 # (F, 1)
    w_dst = w_eff[F:]                                                 # (F, 1)

    # --- tile / pad edges so every grid step is a full, lane-dense block -------
    tile_e = max(128, (min(tile_e, max(E, 1)) + 127) // 128 * 128)
    n_tiles = pl.cdiv(E, tile_e)
    E_pad = n_tiles * tile_e
    pad = E_pad - E
    src_p = jnp.pad(src, (0, pad))   # pad with node 0 (valid index); tail sliced off
    dst_p = jnp.pad(dst, (0, pad))

    # Glue (as in the reference model, the per-edge gather lives outside the kernel):
    # transpose node features once, then gather the edges onto the lane axis.
    h_T = h_nodes.astype(jnp.float32).T                               # (F, N)
    hu_T = jnp.take(h_T, src_p, axis=1)                               # (F, E_pad)
    hv_T = jnp.take(h_T, dst_p, axis=1)                               # (F, E_pad)

    out = pl.pallas_call(
        edge_score_kernel,
        out_shape=jax.ShapeDtypeStruct((1, E_pad), jnp.float32),
        grid_spec=pltpu.PrefetchScalarGridSpec(
            num_scalar_prefetch=0,
            grid=(n_tiles,),
            in_specs=[
                pl.BlockSpec((F, tile_e), lambda i: (0, i)),           # src features
                pl.BlockSpec((F, tile_e), lambda i: (0, i)),           # dst features
                pl.BlockSpec((F, 1), lambda i: (0, 0)),                # W_eff src half
                pl.BlockSpec((F, 1), lambda i: (0, 0)),                # W_eff dst half
                pl.BlockSpec(memory_space=pltpu.MemorySpace.SMEM),     # effective bias
            ],
            out_specs=pl.BlockSpec((1, tile_e), lambda i: (0, i)),     # lane-dense scores
        ),
        compiler_params=pltpu.CompilerParams(
            dimension_semantics=("parallel",)),
    )(hu_T, hv_T, w_src, w_dst, b_eff)
    return out[0, :E]  # .squeeze(1); padded tail dropped


def init_params(key, h_feats, h_dims):
    """Deterministic PyTorch-like (uniform +/- 1/sqrt(fan_in)) init; weights as (in, out)."""
    def linear(key, fan_in, fan_out):
        kw, kb = jax.random.split(key)
        bound = 1.0 / (fan_in ** 0.5)
        w = jax.random.uniform(kw, (fan_in, fan_out), jnp.float32, -bound, bound)
        b = jax.random.uniform(kb, (1, fan_out), jnp.float32, -bound, bound)
        return w, b

    k1, k2, k3 = jax.random.split(key, 3)
    # Layer wiring follows MLPPredictor.__init__ (len(h_dims) == 2 case):
    w1, b1 = linear(k1, h_feats * 2, h_dims[1])   # Linear(2*h_feats, h_dims[1])
    w2, b2 = linear(k2, h_dims[0], h_dims[1])     # Linear(h_dims[0], h_dims[1])
    w3, b3 = linear(k3, h_dims[-1], 1)            # Linear(h_dims[-1], 1)
    return (w1, b1, w2, b2, w3, b3)


def reference_scores(h_nodes, src, dst, params):
    """Pure-JAX reference following the module's layer-by-layer wiring."""
    w1, b1, w2, b2, w3, b3 = params
    x = jnp.concatenate([h_nodes[src], h_nodes[dst]], axis=1)
    h = x @ w1 + b1          # Linear(2*h_feats, h_dims[1])
    # Dropout: eval-mode identity
    h = h @ w2 + b2          # Linear(h_dims[0], h_dims[1])
    s = h @ w3 + b3          # Linear(h_dims[-1], 1)
    return s[:, 0]           # Sigmoid is layers[-1]; apply_edges skips it


if __name__ == "__main__":
    h_feats = 16
    h_dims = [32, 32]   # constructor requires h_dims[i] == h_dims[i-1] to be runnable
    N = 64              # nodes
    E = 1000            # edges (non-multiple of the tile, exercises padding)

    key = jax.random.PRNGKey(0)
    k_h, k_src, k_dst, k_par = jax.random.split(key, 4)

    h_nodes = jax.random.normal(k_h, (N, h_feats), jnp.float32)
    src = jax.random.randint(k_src, (E,), 0, N, dtype=jnp.int32)
    dst = jax.random.randint(k_dst, (E,), 0, N, dtype=jnp.int32)
    params = init_params(k_par, h_feats, h_dims)

    scores = mlp_predictor_scores(h_nodes, src, dst, params, tile_e=512)
    scores = jax.block_until_ready(scores)

    ref = reference_scores(h_nodes, src, dst, params)
    assert scores.shape == (E,)
    assert jnp.allclose(scores, ref, atol=1e-4, rtol=1e-4), float(
        jnp.max(jnp.abs(scores - ref)))

    print("KERNEL_OK")
</pallas_src>

<mosaic_0001>
module attributes {stable_mosaic.version = 11 : i64} {
  func.func @edge_score_kernel(%arg0: i32, %arg1: memref<16x512xf32, #tpu.memory_space<vmem>>, %arg2: memref<16x512xf32, #tpu.memory_space<vmem>>, %arg3: memref<16x1xf32, #tpu.memory_space<vmem>>, %arg4: memref<16x1xf32, #tpu.memory_space<vmem>>, %arg5: memref<1xf32, #tpu.memory_space<smem>>, %arg6: memref<1x512xf32, #tpu.memory_space<vmem>>) attributes {dimension_semantics = [#tpu.dimension_semantics<parallel>], iteration_bounds = array<i64: 2>, scalar_prefetch = 0 : i64, scratch_operands = 0 : i64, tpu.core_type = #tpu.core_type<tc>, window_params = [{transform_indices = @transform_0, window_bounds = array<i64: 16, 512>}, {transform_indices = @transform_1, window_bounds = array<i64: 16, 512>}, {pipeline_mode = #tpu.pipeline_mode<synchronous>, transform_indices = @transform_2, window_bounds = array<i64: 16, 1>}, {pipeline_mode = #tpu.pipeline_mode<synchronous>, transform_indices = @transform_3, window_bounds = array<i64: 16, 1>}, {transform_indices = @transform_4, window_bounds = array<i64: 1>}, {transform_indices = @transform_5, window_bounds = array<i64: 1, 512>}]} {
    %c0 = arith.constant 0 : index
    %c0_0 = arith.constant 0 : index
    %0 = vector.load %arg1[%c0, %c0_0] : memref<16x512xf32, #tpu.memory_space<vmem>>, vector<16x512xf32>
    %c0_1 = arith.constant 0 : index
    %c0_2 = arith.constant 0 : index
    %1 = vector.load %arg3[%c0_1, %c0_2] : memref<16x1xf32, #tpu.memory_space<vmem>>, vector<16x1xf32>
    %2 = vector.broadcast %1 : vector<16x1xf32> to vector<16x512xf32>
    %3 = arith.mulf %0, %2 : vector<16x512xf32>
    %c0_3 = arith.constant 0 : index
    %c0_4 = arith.constant 0 : index
    %4 = vector.load %arg2[%c0_3, %c0_4] : memref<16x512xf32, #tpu.memory_space<vmem>>, vector<16x512xf32>
    %c0_5 = arith.constant 0 : index
    %c0_6 = arith.constant 0 : index
    %5 = vector.load %arg4[%c0_5, %c0_6] : memref<16x1xf32, #tpu.memory_space<vmem>>, vector<16x1xf32>
    %6 = vector.broadcast %5 : vector<16x1xf32> to vector<16x512xf32>
    %7 = arith.mulf %4, %6 : vector<16x512xf32>
    %8 = arith.addf %3, %7 : vector<16x512xf32>
    %cst = arith.constant dense<0.000000e+00> : vector<512xf32>
    %9 = vector.multi_reduction <add>, %8, %cst [0] : vector<16x512xf32> to vector<512xf32>
    %10 = vector.shape_cast %9 : vector<512xf32> to vector<1x512xf32>
    %c0_7 = arith.constant 0 : index
    %11 = memref.load %arg5[%c0_7] : memref<1xf32, #tpu.memory_space<smem>>
    %12 = vector.broadcast %11 : f32 to vector<1x512xf32>
    %13 = arith.addf %10, %12 : vector<1x512xf32>
    %c0_8 = arith.constant 0 : index
    %c0_9 = arith.constant 0 : index
    %14 = vector.load %arg6[%c0_8, %c0_9] : memref<1x512xf32, #tpu.memory_space<vmem>>, vector<1x512xf32>
    tpu.vector_store %arg6[%c0_8, %c0_9], %13 {strides = array<i32>} : memref<1x512xf32, #tpu.memory_space<vmem>>, vector<1x512xf32>,
    return
  }
  func.func @transform_0(%arg0: i32) -> (i32, i32) {
    %c0_i32 = arith.constant 0 : i32
    %c0_i32_0 = arith.constant 0 : i32
    return %c0_i32, %arg0 : i32, i32
  }
  func.func @transform_1(%arg0: i32) -> (i32, i32) {
    %c0_i32 = arith.constant 0 : i32
    %c0_i32_0 = arith.constant 0 : i32
    return %c0_i32, %arg0 : i32, i32
  }
  func.func @transform_2(%arg0: i32) -> (i32, i32) {
    %c0_i32 = arith.constant 0 : i32
    %c0_i32_0 = arith.constant 0 : i32
    %c0_i32_1 = arith.constant 0 : i32
    return %c0_i32, %c0_i32_0 : i32, i32
  }
  func.func @transform_3(%arg0: i32) -> (i32, i32) {
    %c0_i32 = arith.constant 0 : i32
    %c0_i32_0 = arith.constant 0 : i32
    %c0_i32_1 = arith.constant 0 : i32
    return %c0_i32, %c0_i32_0 : i32, i32
  }
  func.func @transform_4(%arg0: i32) -> i32 {
    %c0_i32 = arith.constant 0 : i32
    %c0_i32_0 = arith.constant 0 : i32
    return %c0_i32 : i32
  }
  func.func @transform_5(%arg0: i32) -> (i32, i32) {
    %c0_i32 = arith.constant 0 : i32
    %c0_i32_0 = arith.constant 0 : i32
    return %c0_i32, %arg0 : i32, i32
  }
}

</mosaic_0001>

<bundles_post_ra>
// kernel: tpu_custom_call.1
= control target key start
LH: loop header
LB: loop body
LE: loop exit
PB: predicated region body
PF: predicated region fallthrough
CT: control target
= control target key end

     0   :  { %s963_s0 = inlined_call_operand.hbm [shape: f32[16,1024], index: 0, kind: input, shape index: {}]   ;;  %s964_s1 = inlined_call_operand.hbm [shape: f32[16,1024], index: 1, kind: input, shape index: {}]   ;;  %s965_s2 = inlined_call_operand.vmem [shape: f32[16,1], index: 2, kind: input, shape index: {}]   ;;  %s966_s3 = inlined_call_operand.vmem [shape: f32[16,1], index: 3, kind: input, shape index: {}]   ;;  %s967_s4 = inlined_call_operand.<no memory space> [shape: f32[1], index: 4, kind: input, shape index: {}]   ;;  %s968_s5 = inlined_call_operand.hbm [shape: f32[1,1024], index: 5, kind: output, shape index: {}]  }
   0x1   :  { %971 = sst [smem:[#allocation14_spill]] %s963_s0 }
   0x2   :  { %10 = sst [smem:[#allocation2]] %s967_s4 }
   0x3   :  { %11 = vsyncpa [#allocation4], 0 }
   0x4   :  { %13 = vsyncpa [#allocation4 + $0x1], 0 }
   0x5   :  { %14 = vsyncpa [#allocation7], 0 }
   0x6   :  { %16 = vsyncpa [#allocation7 + $0x1], 0 }
   0x7   :  { %17 = vsyncpa [#allocation5], 0 }
   0x8   :  { %19 = vsyncpa [#allocation5 + $0x1], 0  ;;  %s762_s20 = smov 0   ;;  %s764_s21 = smov 0  }
   0x9   :  { %s766_s22 = smov 0   ;;  %s768_s23 = smov 0  }
   0xa LB: > { %972 = sst [smem:[#allocation12_spill]] %s719_s22  ;;  %s783_s4 = sadd.s32 4294967295, %s723_s23   ;;  %s723_s23 = sphi %s768_s23, %s986_s23   ;;  %s719_s22 = sphi %s766_s22, %s983_s22   ;;  %s715_s21 = sphi %s764_s21, %s985_s21   ;;  %s711_s20 = sphi %s762_s20, %s984_s20  }
   0xb   : > { %s517_s24 = sadd.s32 4294967294, %s723_s23   ;;  %s787_s25 = sadd.s32 1, %s723_s23  }
   0xc   : > { %s32_s26 = sadd.s32 1, %s719_s22  ;;  %s29_s27 = ssub.s32 %s723_s23, %s787_s25 }
   0xd   : > { %p39_p0 = scmp.ne.s32.totalorder %s719_s22, %s715_s21  ;;  %p30_p1 = scmp.eq.s32.totalorder %s29_s27, 0 }
   0xe   : > { %p40_p2 = scmp.eq.s32.totalorder %s723_s23, 0  ;;  %p45_p3 = scmp.ne.s32.totalorder %s715_s21, %s711_s20 }
   0xf   : > { %p46_p4 = scmp.eq.s32.totalorder %s783_s4, 0  ;;  %p158_p7 = scmp.eq.s32.totalorder %s783_s4, 1 }
  0x10   : > { %s799_s28 = scalar_select %p30_p1, %s719_s22, %s32_s26  }
  0x11   : > { %p801_p5 = por %p40_p2, %p39_p0  ;;  %p805_p6 = por %p46_p4, %p45_p3 }
  0x12   : > { %973 = sst [smem:[#allocation13_spill]] %s799_s28  ;;  %p164_p8 = scmp.eq.s32.totalorder %s517_s24, 1 }
  0x13   : > { %p519_p9 = scmp.ge.s32.totalorder %s723_s23, 2  ;;  %p553_p10 = scmp.lt.s32.totalorder %s723_s23, 2 }
  0x14   : > { %p812_p11 = por %p158_p7, %p39_p0  ;;  %p816_p12 = por %p164_p8, %p45_p3 }
  0x15   : > { %s821_s8 = sand.u32 1, %s719_s22   ;;  %s534_s9 = sshll.u32 %s723_s23, 5 }
  0x16   : > { %s969_s10 = sshll.u32 %s821_s8, 6  ;;  %s978_s0 = sld [smem:[#allocation14_spill]] }
  0x17   : > { %s197_s15 = scalar_lea.vmem [#allocation3], %s969_s10  ;;  %p834_p13 = pnand %p553_p10, %p801_p5 }
  0x18   : > { %s205_s16 = sshll.u32 %s197_s15, 4  ;;  %p526_p0 = scmp.ge.s32.totalorder %s723_s23, 1  ;;  %s206_s16 = int_to_ptr.vmem [resolvable:$true] %s205_s16 }
  0x19   : > { %s194_s18 = scalar_lea.sflag [#allocation4], %s821_s8  ;;  %p597_p2 = pneg %p834_p13 }
  0x1c   : > { %s202_s13 = scalar_lea.hbm %s978_s0, %s534_s9  ;;  %s600_s29 = scalar_lea.hbm %s978_s0, 128 }
  0x1d   : > { %s203_s14 = sshll.u32 %s202_s13, 4  ;;  %s204_s14 = int_to_ptr.hbm [resolvable:$true] %s203_s14 }
  0x1e   : > { %s593_s19 = sshra.s32 %s204_s14, 4  ;;  %s594_s19 = int_to_ptr.hbm [resolvable:$true] %s593_s19 }
  0x1f   : > { %s595_s24 = scalar_lea.hbm %s594_s19, 64  ;;  %p601_p5 = scmp.lt.s32.totalorder %s594_s19, %s978_s0 }
  0x20   : > { %p596_p1 = scmp.ne.s32.totalorder %s594_s19, %s595_s24  ;;  %p602_p7 = scmp.lt.s32.totalorder %s600_s29, %s595_s24 }
  0x22   : > { %p598_p3 = pnand %p597_p2, %p596_p1  ;;  %p603_p8 = por %p602_p7, %p601_p5 }
  0x24   : > { %p599_p4 = pneg %p598_p3 }
  0x26   : > { %p604_p10 = pnand %p603_p8, %p599_p4 }
  0x28   : > { %607 = shalt.err (!%p604_p10)
}
  0x29   : > { %s725_s13 = smov 1024   ;;  %s726_s15 = smov 512  }
  0x2a   : > { %s727_s10 = smov 32   ;;  %p235_p1 = scmp.lt.s32.totalorder %s723_s23, 3 }
  0x2b   : > { %545 = dma.hbm_to_vmem [thread:$0]  (!%p834_p13), %s204_s14, 1024, %s206_s16, %s194_s18, %s725_s13, %s726_s15, %s727_s10  }
  0x2c   : > { %s224_s26 = scalar_lea.hbm %s964_s1, %s534_s9  ;;  %p862_p3 = pnand %p526_p0, %p235_p1 }
  0x2d   : > { %s225_s29 = sshll.u32 %s224_s26, 4  ;;  %s981_s11 = sshll.u32 %s821_s8, 6  ;;  %s226_s29 = int_to_ptr.hbm [resolvable:$true] %s225_s29 }
  0x2e   : > { %s219_s12 = scalar_lea.vmem [#allocation6], %s981_s11  ;;  %s216_s28 = scalar_lea.sflag [#allocation7], %s821_s8 }
  0x2f   : > { %s227_s0 = sshll.u32 %s219_s12, 4  ;;  %s623_s22 = sshra.s32 %s226_s29, 4  ;;  %s228_s0 = int_to_ptr.vmem [resolvable:$true] %s227_s0  ;;  %s624_s22 = int_to_ptr.hbm [resolvable:$true] %s623_s22 }
  0x30   : > { %s625_s14 = scalar_lea.hbm %s624_s22, 64  ;;  %s630_s18 = scalar_lea.hbm %s964_s1, 128 }
  0x31   : > { %p626_p4 = scmp.ne.s32.totalorder %s624_s22, %s625_s14  ;;  %p631_p0 = scmp.lt.s32.totalorder %s624_s22, %s964_s1 }
  0x32   : > { %p632_p8 = scmp.lt.s32.totalorder %s630_s18, %s625_s14 }
  0x33   : > { %p628_p5 = pnand %p626_p4, %p597_p2 }
  0x34   : > { %p633_p10 = por %p632_p8, %p631_p0 }
  0x35   : > { %p629_p7 = pneg %p628_p5 }
  0x37   : > { %p634_p1 = pnand %p633_p10, %p629_p7 }
  0x39   : > { %637 = shalt.err (!%p634_p1)
}
  0x3a   : > { %548 = dma.hbm_to_vmem [thread:$0]  (!%p834_p13), %s226_s29, 1024, %s228_s0, %s216_s28, %s725_s13, %s726_s15, %s727_s10  }
  0x3b   : > { %239 = sbr.rel (%p862_p3) target bundleno = 220 (0xdc), region = 40  ;;  %s884_s8 = sand.u32 (!%p862_p3), 1, %s715_s21  }
  0x3c   : > { %s527_s26 = sshll.u32 (!%p862_p3), %s884_s8, 6  ;;  %s242_s11 = scalar_lea.sflag (!%p862_p3), [#allocation4], %s884_s8 }
  0x3d   : > { %s888_s22 = scalar_lea.vmem (!%p862_p3), [#allocation3], %s527_s26 }
  0x40   : > { %698 = dma.done.wait (%p805_p6), %s242_s11, 1024  }
  0x41   : > { %700 = vsyncadd (%p805_p6), %s242_s11, 4294966272  ;;  %s252_s0 = scalar_lea.sflag [#allocation7], %s884_s8  ;;  %s895_s28 = scalar_lea.vmem [#allocation6], %s527_s26 }
  0x42   : > { %702 = dma.done.wait (%p805_p6), %s252_s0, 1024  }
  0x43   : > { %704 = vsyncadd (%p805_p6), %s252_s0, 4294966272  ;;  %v728_v0 = vmov 0   ;;  %v327_v1 = vld [vmem:[%s966_s3] sm:$0xff]  ;;  %v328_v3 = vld [vmem:[%s966_s3 + $0x8] sm:$0xff]  ;;  %s383_s14 = sld [smem:[#allocation2]]  ;;  %s529_s9 = sshll.u32 %s884_s8, 2 }
  0x44   : > { %592 = vset.pattern.permute.xlu1 %v728_v0  ;;  %591 = vset.pattern.permute.xlu0 %v728_v0  ;;  %v299_v2 = vld [vmem:[%s965_s2] sm:$0xff]  ;;  %v300_v4 = vld [vmem:[%s965_s2 + $0x8] sm:$0xff]  ;;  %v321_v9 = vld [vmem:[%s895_s28 + $0x10] sm:$0xff]  ;;  %s531_s16 = sshll.u32 %s783_s4, 2  ;;  %vm396_vm0 = vcmask 1040384   ;;  %vm398_vm1 = vcmask 1042434  }
  0x45   : > { %331 = vperm.xlu1 %592, %v327_v1   ;;  %303 = vperm.xlu0 %591, %v299_v2   ;;  %v319_v7 = vld [vmem:[%s895_s28] sm:$0xff]  ;;  %v320_v8 = vld [vmem:[%s895_s28 + $0x8] sm:$0xff]  ;;  %v322_v10 = vld [vmem:[%s895_s28 + $0x18] sm:$0xff]  ;;  %s419_s24 = scalar_lea.hbm %s968_s5, %s531_s16  ;;  %vm400_vm2 = vcmask 1041408   ;;  %s287_s4 = scalar_lea.vmem [#allocation8], %s529_s9 }
  0x46   : > { %v291_v11 = vld [vmem:[%s888_s22] sm:$0xff]  ;;  %v292_v12 = vld [vmem:[%s888_s22 + $0x8] sm:$0xff]  ;;  %v293_v13 = vld [vmem:[%s888_s22 + $0x10] sm:$0xff]  ;;  %s421_s26 = sshll.u32 %s287_s4, 4  ;;  %s423_s11 = sshll.u32 %s419_s24, 4  ;;  %s422_s26 = int_to_ptr.vmem [resolvable:$true] %s421_s26  ;;  %s424_s11 = int_to_ptr.hbm [resolvable:$true] %s423_s11 }
  0x47   : > { %v294_v14 = vld [vmem:[%s888_s22 + $0x18] sm:$0xff]  ;;  %v323_v15 = vld [vmem:[%s895_s28 + $0x20] sm:$0xff]  ;;  %v324_v16 = vld [vmem:[%s895_s28 + $0x28] sm:$0xff]  ;;  %s667_s0 = sshra.s32 %s424_s11, 4  ;;  %s673_s13 = scalar_lea.hbm %s968_s5, 8  ;;  %s668_s0 = int_to_ptr.hbm [resolvable:$true] %s667_s0 }
  0x48   : > { %v325_v21 = vld [vmem:[%s895_s28 + $0x30] sm:$0xff]  ;;  %v326_v22 = vld [vmem:[%s895_s28 + $0x38] sm:$0xff]  ;;  %v295_v23 = vld [vmem:[%s888_s22 + $0x20] sm:$0xff]  ;;  %s669_s28 = scalar_lea.hbm %s668_s0, 4  ;;  %p674_p3 = scmp.lt.s32.totalorder %s668_s0, %s968_s5 }
  0x49   : > { %v296_v28 = vld [vmem:[%s888_s22 + $0x28] sm:$0xff]  ;;  %v297_v29 = vld [vmem:[%s888_s22 + $0x30] sm:$0xff]  ;;  %v298_v30 = vld [vmem:[%s888_s22 + $0x38] sm:$0xff]  ;;  %s409_s22 = scalar_lea.sflag [#allocation5], %s884_s8  ;;  %p670_p6 = scmp.ne.s32.totalorder %s668_s0, %s669_s28 }
  0x4a   : > { %p675_p4 = scmp.lt.s32.totalorder %s673_s13, %s669_s28 }
  0x4b   : > { %p671_p13 = pnand %p670_p6, %p812_p11 }
  0x4c   : > { %p676_p5 = por %p675_p4, %p674_p3 }
  0x4d   : > { %336 = vperm.xlu1 %592, %v328_v3   ;;  %308 = vperm.xlu0 %591, %v300_v4   ;;  %p672_p2 = pneg %p671_p13 }
  0x4f   : > { %p677_p7 = pnand %p676_p5, %p672_p2 }
  0xb7   : > { %v332_v5 = vpop.permute.xlu1 %331  ;;  %v304_v6 = vpop.permute.xlu0 %303 }
  0xb8   : > { %v339_v17 = vmul.f32 %v332_v5, %v319_v7  ;;  %v340_v18 = vmul.f32 %v332_v5, %v320_v8  ;;  %v341_v19 = vmul.f32 %v332_v5, %v321_v9  ;;  %v342_v20 = vmul.f32 %v332_v5, %v322_v10 }
  0xb9   : > { %v311_v24 = vmul.f32 %v304_v6, %v291_v11  ;;  %v312_v25 = vmul.f32 %v304_v6, %v292_v12  ;;  %v313_v26 = vmul.f32 %v304_v6, %v293_v13  ;;  %v314_v27 = vmul.f32 %v304_v6, %v294_v14 }
  0xba   : > { %v384_v9 = vstv %s383_s14  ;;  %v403_v14 = vlaneseq }
  0xbb   : > { %v347_v41 = vadd.f32 %v339_v17, %v311_v24  ;;  %v348_v42 = vadd.f32 %v340_v18, %v312_v25  ;;  %v349_v43 = vadd.f32 %v341_v19, %v313_v26  ;;  %v350_v44 = vadd.f32 %v342_v20, %v314_v27 }
  0xbc   : > { %vm405_vm3 = vcmp.lt.s32.totalorder %v403_v14, 512 }
  0xbf   : > { %v337_v31 = vpop.permute.xlu1 %336  ;;  %v309_v32 = vpop.permute.xlu0 %308 }
  0xc0   : > { %v343_v33 = vmul.f32 %v337_v31, %v323_v15  ;;  %v344_v34 = vmul.f32 %v337_v31, %v324_v16  ;;  %v345_v35 = vmul.f32 %v337_v31, %v325_v21  ;;  %v346_v36 = vmul.f32 %v337_v31, %v326_v22 }
  0xc1   : > { %v315_v37 = vmul.f32 %v309_v32, %v295_v23  ;;  %v316_v38 = vmul.f32 %v309_v32, %v296_v28  ;;  %v317_v39 = vmul.f32 %v309_v32, %v297_v29  ;;  %v318_v40 = vmul.f32 %v309_v32, %v298_v30 }
  0xc3   : > { %v351_v45 = vadd.f32 %v343_v33, %v315_v37  ;;  %v352_v46 = vadd.f32 %v344_v34, %v316_v38  ;;  %v353_v47 = vadd.f32 %v345_v35, %v317_v39  ;;  %v354_v48 = vadd.f32 %v346_v36, %v318_v40 }
  0xc5   : > { %v355_v49 = vadd.f32 %v351_v45, %v347_v41  ;;  %v362_v50 = vadd.f32 %v352_v46, %v348_v42  ;;  %v369_v51 = vadd.f32 %v353_v47, %v349_v43  ;;  %v376_v52 = vadd.f32 %v354_v48, %v350_v44 }
  0xc7   : > { %v356_v53 = vrot.slane %v355_v49, 4  ;;  %v363_v54 = vrot.slane %v362_v50, 4  ;;  %v370_v55 = vrot.slane %v369_v51, 4  ;;  %v377_v56 = vrot.slane %v376_v52, 4 }
  0xc9   : > { %v357_v57 = vadd.f32 %v356_v53, %v355_v49  ;;  %v364_v58 = vadd.f32 %v363_v54, %v362_v50  ;;  %v371_v59 = vadd.f32 %v370_v55, %v369_v51  ;;  %v378_v60 = vadd.f32 %v377_v56, %v376_v52 }
  0xcb   : > { %v358_v61 = vrot.slane %v357_v57, 2  ;;  %v365_v62 = vrot.slane %v364_v58, 2  ;;  %v372_v63 = vrot.slane %v371_v59, 2  ;;  %v379_v0 = vrot.slane %v378_v60, 2 }
  0xcd   : > { %v359_v1 = vadd.f32 %v358_v61, %v357_v57  ;;  %v366_v2 = vadd.f32 %v365_v62, %v364_v58  ;;  %v373_v3 = vadd.f32 %v372_v63, %v371_v59  ;;  %v380_v4 = vadd.f32 %v379_v0, %v378_v60 }
  0xcf   : > { %v360_v5 = vrot.slane %v359_v1, 1  ;;  %v367_v6 = vrot.slane %v366_v2, 1  ;;  %v374_v7 = vrot.slane %v373_v3, 1  ;;  %v381_v8 = vrot.slane %v380_v4, 1 }
  0xd1   : > { %v361_v10 = vadd.f32 %v360_v5, %v359_v1  ;;  %v368_v11 = vadd.f32 %v367_v6, %v366_v2  ;;  %v375_v12 = vadd.f32 %v374_v7, %v373_v3  ;;  %v382_v13 = vadd.f32 %v381_v8, %v380_v4 }
  0xd3   : > { %v386_v15 = vadd.f32 %v384_v9, %v368_v11  ;;  %v387_v16 = vadd.f32 %v384_v9, %v375_v12  ;;  %v388_v17 = vadd.f32 %v384_v9, %v382_v13  ;;  %v385_v18 = vadd.f32 %v384_v9, %v361_v10 }
  0xd5   : > { %v393_v19 = vrot.slane %v386_v15, 7  ;;  %v394_v20 = vrot.slane %v387_v16, 6  ;;  %v395_v21 = vrot.slane %v388_v17, 5 }
  0xd7   : > { %v397_v22 = vsel %vm396_vm0, %v385_v18, %v393_v19  ;;  %v399_v23 = vsel %vm398_vm1, %v394_v20, %v395_v21 }
  0xd8   : > { %v401_v24 = vsel %vm400_vm2, %v397_v22, %v399_v23 }
  0xd9   : > { %407 = vst.msk [vmem:[%s287_s4] sm:$0xf] %vm405_vm3, %v401_v24 }
  0xda   : > { %680 = shalt.err (!%p677_p7)
}
  0xdb   : > { %540 = dma.vmem_to_hbm [thread:$0]  (%p812_p11), %s422_s26, 64, %s424_s11, %s409_s22  }
  0xdc PF: > { %s435_s8 = sand.u32 1, %s711_s20   ;;  %p550_p0 = pnand %p519_p9, %p816_p12 }
  0xdd   : > { %s436_s27 = scalar_lea.sflag [#allocation5], %s435_s8 }
  0xde   : > { %p551_p8 = pneg %p550_p0 }
  0xe0   : > { %706 = dma.done.wait (%p551_p8), %s436_s27, 64  }
  0xe1   : > { %708 = vsyncadd (%p551_p8), %s436_s27, 4294967232  ;;  %s982_s29 = sld [smem:[#allocation12_spill]]  ;;  %p22_p10 = scmp.ge.s32.totalorder %s787_s25, 4  }
  0xe2   : > { %s983_s22 = sld [smem:[#allocation13_spill]]  ;;  %s984_s20 = smov %s715_s21 }
  0xe3   : > { %s986_s23 = smov %s787_s25  ;;  %24 = sbr.rel (!%p22_p10) target bundleno = 10 (0xa), region = 98 }
  0xe7   : > { %s985_s21 = smov %s982_s29 }
  0xe8   :  { %442 = vsyncpa [#allocation4], 1 }
  0xe9   :  { %444 = vsyncpa [#allocation4 + $0x1], 1 }
  0xea   :  { %445 = vsyncpa [#allocation7], 1 }
  0xeb   :  { %447 = vsyncpa [#allocation7 + $0x1], 1 }
  0xec   :  { %448 = vsyncpa [#allocation5], 1 }
  0xed   :  { %450 = vsyncpa [#allocation5 + $0x1], 1 }

</bundles_post_ra>
